<compile_context>
chip_gen: v6e
topology: v6e:2x2x1
jax: 0.10.0
libtpu: 0.0.40
codegen_flags: <defaults>
</compile_context>

<pallas_src>
import functools

import jax
import jax.numpy as jnp
from jax.experimental import pallas as pl
from jax.experimental.pallas import tpu as pltpu


def _round_up(x: int, m: int) -> int:
    return ((x + m - 1) // m) * m


def _cdiv(a: int, b: int) -> int:
    return (a + b - 1) // b


def _agg_kernel_blockdiag(x_ref, w1_ref, b1_ref, w2_ref, e_ref, s_ref, o_ref):
    """One batch tile, block-diagonal gate path.

    x_ref : [TB, A*nm]   flattened (agent, feature) slab
    w1_ref: [A*nm, A*H]  kron(I_A, W1)   (resident)
    b1_ref: [1, A*H]     tiled gate bias 1
    w2_ref: [A*H, A]     kron(I_A, W2)   (resident)
    e_ref : [A, A*nm]    kron(I_A, ones(1, nm))  -- lane expansion of gates
    s_ref : [A*nm, nm]   kron(ones(A,1), I_nm)   -- sum over agents per feature
    o_ref : [TB, nm]
    """
    x = x_ref[...]

    # Shared gate MLP applied to all agents of the tile with two MXU matmuls.
    h = jnp.dot(x, w1_ref[...], preferred_element_type=jnp.float32) + b1_ref[...]
    h = jnp.maximum(h, 0.0)
    g = jnp.dot(h, w2_ref[...], preferred_element_type=jnp.float32)       # [TB, A]

    # Numerically-stable softmax over agents (agents live on lanes).  The
    # normalisation is linear, so it is deferred to after the weighted sum.
    m = jnp.max(g, axis=-1, keepdims=True)
    e = jnp.exp(g - m)                                                    # [TB, A]
    # A-lane reduce on ~TB/8 vregs only; cheaper than an N=1 MXU matvec here.
    denom = jnp.sum(e, axis=-1, keepdims=True)                            # [TB, 1]

    # Weighted sum over agents on the MXU (no per-agent lane slices/broadcasts):
    #   e_exp[:, a*nm + j] = e[:, a];   num[:, j] = sum_a x[:, a*nm + j] * e[:, a]
    e_exp = jnp.dot(e, e_ref[...], preferred_element_type=jnp.float32)    # [TB, A*nm]
    num = jnp.dot(x * e_exp, s_ref[...], preferred_element_type=jnp.float32)  # [TB, nm]

    o_ref[...] = (num * (1.0 / denom)).astype(o_ref.dtype)


def _agg_kernel_looped(x_ref, w1_ref, b1_ref, w2t_ref, o_ref, *, num_agents, out_dim):
    """O(A) fallback used when kron(I_A, W1) would be too large for VMEM.

    x_ref  : [TB, A*nm]
    w1_ref : [nm, H]   shared gate weight 1
    b1_ref : [1, H]
    w2t_ref: [1, H]    shared gate weight 2 (transposed; head output dim is 1)
    o_ref  : [TB, nm]
    """
    x = x_ref[...]
    w1 = w1_ref[...]
    b1 = b1_ref[...]
    w2t = w2t_ref[...]

    gates = []
    for a in range(num_agents):
        xa = x[:, a * out_dim:(a + 1) * out_dim]
        ha = jnp.maximum(jnp.dot(xa, w1, preferred_element_type=jnp.float32) + b1, 0.0)
        gates.append(jnp.sum(ha * w2t, axis=-1, keepdims=True))           # [TB, 1]

    m = gates[0]
    for a in range(1, num_agents):
        m = jnp.maximum(m, gates[a])
    exps = [jnp.exp(g - m) for g in gates]
    denom = exps[0]
    for a in range(1, num_agents):
        denom = denom + exps[a]

    acc = x[:, 0:out_dim] * exps[0]
    for a in range(1, num_agents):
        acc = acc + x[:, a * out_dim:(a + 1) * out_dim] * exps[a]
    o_ref[...] = (acc * (1.0 / denom)).astype(o_ref.dtype)


def aggregator_forward(agent_outputs, w1, b1, w2, b2, *,
                       batch_tile=4096,
                       stream_dtype=None,
                       max_blockdiag_bytes=4 * 1024 * 1024):
    """agent_outputs: [B, A, nm] -> [B, nm]; matches the PyTorch Aggregator."""
    B, A, nm = agent_outputs.shape
    nm_w, H = w1.shape
    assert nm_w == nm
    # b2 is one scalar added to every agent's gate, hence softmax-invariant; it
    # is dropped from the kernel.  Guard the shape assumption explicitly.
    assert w2.shape == (H, 1), "gate head must have output dim 1 (b2 drop relies on it)"
    assert b2.shape == (1,)
    del b2

    out_dtype = agent_outputs.dtype
    if A == 1:
        # PyTorch path: single agent is an identity squeeze.
        return agent_outputs[:, 0, :]

    if stream_dtype is not None and stream_dtype != agent_outputs.dtype:
        # Optional HBM-traffic reduction for the read-bound input slab.
        agent_outputs = agent_outputs.astype(stream_dtype)
    x2 = agent_outputs.reshape(B, A * nm)          # lane-dense, free row-major view
    in_bytes = x2.dtype.itemsize
    sublane = 16 if in_bytes == 2 else 8           # bf16 packs (16,128) tiles

    # kron(I_A, W1/W2) is O(A^2) in VMEM and FLOPs -> guard it.
    blockdiag_bytes = 4 * (A * nm * A * H + A * H * A + A * H + A * A * nm + A * nm * nm)
    use_blockdiag = blockdiag_bytes <= max_blockdiag_bytes

    # VMEM-budget-aware batch tile (v7x has only 64 MiB physical VMEM).
    vmem_budget = 40 << 20
    resident = blockdiag_bytes if use_blockdiag else 4 * (nm * H + 2 * H)
    per_row = (2 * A * nm * in_bytes               # double-buffered input slab
               + 2 * nm * 4                        # double-buffered output tile
               + (A * nm + A * H + 4 * A + 2 * nm) * 4)  # f32 temps (e_exp, h, gates, num)
    rows = max((vmem_budget - 2 * resident) // per_row, sublane)
    tb = min(batch_tile, rows, _round_up(B, sublane))
    if B >= 2 * sublane:
        # Keep >= 2 grid steps so the "parallel" batch axis can shard across
        # both TensorCores on v7x.
        tb = min(tb, _round_up(_cdiv(B, 2), sublane))
    tb = max(sublane, (tb // sublane) * sublane)

    num_tiles = _cdiv(B, tb)   # ragged last block allowed: no wrapper-side pad.

    compiler_params = pltpu.CompilerParams(
        dimension_semantics=("parallel",),
        vmem_limit_bytes=48 << 20,
    )

    if use_blockdiag:
        eye_a = jnp.eye(A, dtype=w1.dtype)
        w1_bd = jnp.kron(eye_a, w1)                                     # [A*nm, A*H]
        w2_bd = jnp.kron(eye_a, w2)                                     # [A*H, A]
        b1_t = jnp.tile(b1, A).reshape(1, A * H)                        # [1, A*H]
        e_mat = jnp.kron(eye_a, jnp.ones((1, nm), dtype=w1.dtype))      # [A, A*nm]
        s_mat = jnp.kron(jnp.ones((A, 1), dtype=w1.dtype),
                         jnp.eye(nm, dtype=w1.dtype))                   # [A*nm, nm]

        kernel = _agg_kernel_blockdiag
        in_specs = [
            pl.BlockSpec((tb, A * nm), lambda b: (b, 0)),               # batch slab
            pl.BlockSpec((A * nm, A * H), lambda b: (0, 0)),            # W1_bd (resident)
            pl.BlockSpec((1, A * H), lambda b: (0, 0)),                 # b1 (resident)
            pl.BlockSpec((A * H, A), lambda b: (0, 0)),                 # W2_bd (resident)
            pl.BlockSpec((A, A * nm), lambda b: (0, 0)),                # E (resident)
            pl.BlockSpec((A * nm, nm), lambda b: (0, 0)),               # S (resident)
        ]
        operands = (x2, w1_bd, b1_t, w2_bd, e_mat, s_mat)
    else:
        kernel = functools.partial(_agg_kernel_looped, num_agents=A, out_dim=nm)
        in_specs = [
            pl.BlockSpec((tb, A * nm), lambda b: (b, 0)),               # batch slab
            pl.BlockSpec((nm, H), lambda b: (0, 0)),                    # W1 (resident)
            pl.BlockSpec((1, H), lambda b: (0, 0)),                     # b1 (resident)
            pl.BlockSpec((1, H), lambda b: (0, 0)),                     # W2^T (resident)
        ]
        operands = (x2, w1, b1.reshape(1, H), w2.reshape(1, H))

    return pl.pallas_call(
        kernel,
        out_shape=jax.ShapeDtypeStruct((B, nm), out_dtype),
        grid_spec=pltpu.PrefetchScalarGridSpec(
            num_scalar_prefetch=0,
            grid=(num_tiles,),
            in_specs=in_specs,
            out_specs=pl.BlockSpec((tb, nm), lambda b: (b, 0)),
        ),
        compiler_params=compiler_params,
    )(*operands)


def reference_forward(agent_outputs, w1, b1, w2, b2):
    """Pure-JAX reference matching the PyTorch semantics (including b2)."""
    h = jnp.maximum(jnp.einsum("ban,nh->bah", agent_outputs, w1) + b1, 0.0)
    g = jnp.einsum("bah,ho->bao", h, w2) + b2                 # [B, A, 1]
    wts = jax.nn.softmax(g, axis=1)                           # softmax over agents
    return jnp.sum(agent_outputs * wts, axis=1)               # [B, nm]


if __name__ == "__main__":
    # Small deterministic example: B batches, A agents, nm features, hidden_dim=4.
    B, A, nm, H = 2, 8, 32, 4

    key = jax.random.PRNGKey(0)
    k_x, k_w1, k_b1, k_w2, k_b2 = jax.random.split(key, 5)

    agent_outputs = jax.random.normal(k_x, (B, A, nm), dtype=jnp.float32)
    w1 = jax.random.normal(k_w1, (nm, H), dtype=jnp.float32) * (1.0 / jnp.sqrt(nm))
    b1 = jax.random.normal(k_b1, (H,), dtype=jnp.float32) * 0.01
    w2 = jax.random.normal(k_w2, (H, 1), dtype=jnp.float32) * (1.0 / jnp.sqrt(H))
    b2 = jax.random.normal(k_b2, (1,), dtype=jnp.float32) * 0.01

    out = jax.block_until_ready(aggregator_forward(agent_outputs, w1, b1, w2, b2))
    ref = reference_forward(agent_outputs, w1, b1, w2, b2)
    assert out.shape == (B, nm)
    assert jnp.allclose(out, ref, atol=1e-4, rtol=1e-4), "mismatch (block-diag path)"

    # Ragged batch: multi-tile grid with a partial last block, no wrapper pad.
    B2 = 13
    x_b2 = jax.random.normal(jax.random.PRNGKey(1), (B2, A, nm), dtype=jnp.float32)
    ref2 = reference_forward(x_b2, w1, b1, w2, b2)
    out2 = jax.block_until_ready(
        aggregator_forward(x_b2, w1, b1, w2, b2, batch_tile=8))
    assert out2.shape == (B2, nm)
    assert jnp.allclose(out2, ref2, atol=1e-4, rtol=1e-4), "mismatch (ragged multi-tile)"

    # Forced O(A) gate fallback (exercises the kron(I_A, W1) VMEM guard).
    out3 = jax.block_until_ready(
        aggregator_forward(x_b2, w1, b1, w2, b2, batch_tile=8, max_blockdiag_bytes=0))
    assert jnp.allclose(out3, ref2, atol=1e-4, rtol=1e-4), "mismatch (looped gate path)"

    # Optional bf16 input streaming (halves HBM reads; looser tolerance by design).
    out4 = jax.block_until_ready(
        aggregator_forward(x_b2, w1, b1, w2, b2, stream_dtype=jnp.bfloat16))
    assert jnp.allclose(out4, ref2, atol=5e-2, rtol=5e-2), "mismatch (bf16 streaming path)"

    print("KERNEL_OK")
</pallas_src>

<mosaic_0001>
module attributes {stable_mosaic.version = 11 : i64} {
  func.func @_agg_kernel_blockdiag(%arg0: i32, %arg1: memref<8x256xf32, #tpu.memory_space<vmem>>, %arg2: memref<256x32xf32, #tpu.memory_space<vmem>>, %arg3: memref<1x32xf32, #tpu.memory_space<vmem>>, %arg4: memref<32x8xf32, #tpu.memory_space<vmem>>, %arg5: memref<8x256xf32, #tpu.memory_space<vmem>>, %arg6: memref<256x32xf32, #tpu.memory_space<vmem>>, %arg7: memref<8x32xf32, #tpu.memory_space<vmem>>) attributes {dimension_semantics = [#tpu.dimension_semantics<parallel>], iteration_bounds = array<i64: 1>, scalar_prefetch = 0 : i64, scratch_operands = 0 : i64, tpu.core_type = #tpu.core_type<tc>, window_params = [{transform_indices = @transform_0, window_bounds = array<i64: 8, 256>}, {pipeline_mode = #tpu.pipeline_mode<synchronous>, transform_indices = @transform_1, window_bounds = array<i64: 256, 32>}, {pipeline_mode = #tpu.pipeline_mode<synchronous>, transform_indices = @transform_2, window_bounds = array<i64: 1, 32>}, {pipeline_mode = #tpu.pipeline_mode<synchronous>, transform_indices = @transform_3, window_bounds = array<i64: 32, 8>}, {pipeline_mode = #tpu.pipeline_mode<synchronous>, transform_indices = @transform_4, window_bounds = array<i64: 8, 256>}, {pipeline_mode = #tpu.pipeline_mode<synchronous>, transform_indices = @transform_5, window_bounds = array<i64: 256, 32>}, {transform_indices = @transform_6, window_bounds = array<i64: 8, 32>}]} {
    %c0 = arith.constant 0 : index
    %c0_0 = arith.constant 0 : index
    %0 = vector.load %arg1[%c0, %c0_0] : memref<8x256xf32, #tpu.memory_space<vmem>>, vector<8x256xf32>
    %c0_1 = arith.constant 0 : index
    %c0_2 = arith.constant 0 : index
    %1 = vector.load %arg2[%c0_1, %c0_2] : memref<256x32xf32, #tpu.memory_space<vmem>>, vector<256x32xf32>
    %cst = arith.constant dense<0.000000e+00> : vector<8x32xf32>
    %2 = tpu.matmul %0, %1, %cst {dimension_numbers = #tpu.dot_dimension_numbers<[1], [0], [0], [1], [0, 0, 1, 1], [], []>} : vector<8x256xf32>, vector<256x32xf32>, vector<8x32xf32> -> vector<8x32xf32>
    %c0_3 = arith.constant 0 : index
    %c0_4 = arith.constant 0 : index
    %3 = vector.load %arg3[%c0_3, %c0_4] : memref<1x32xf32, #tpu.memory_space<vmem>>, vector<1x32xf32>
    %4 = vector.broadcast %3 : vector<1x32xf32> to vector<8x32xf32>
    %5 = arith.addf %2, %4 : vector<8x32xf32>
    %cst_5 = arith.constant 0.000000e+00 : f32
    %6 = vector.broadcast %cst_5 : f32 to vector<8x32xf32>
    %7 = arith.maximumf %5, %6 : vector<8x32xf32>
    %c0_6 = arith.constant 0 : index
    %c0_7 = arith.constant 0 : index
    %8 = vector.load %arg4[%c0_6, %c0_7] : memref<32x8xf32, #tpu.memory_space<vmem>>, vector<32x8xf32>
    %cst_8 = arith.constant dense<0.000000e+00> : vector<8x8xf32>
    %9 = tpu.matmul %7, %8, %cst_8 {dimension_numbers = #tpu.dot_dimension_numbers<[1], [0], [0], [1], [0, 0, 1, 1], [], []>} : vector<8x32xf32>, vector<32x8xf32>, vector<8x8xf32> -> vector<8x8xf32>
    %cst_9 = arith.constant dense<0xFF800000> : vector<8xf32>
    %10 = vector.multi_reduction <maximumf>, %9, %cst_9 [1] : vector<8x8xf32> to vector<8xf32>
    %11 = vector.shape_cast %10 : vector<8xf32> to vector<8x1xf32>
    %12 = vector.broadcast %11 : vector<8x1xf32> to vector<8x8xf32>
    %13 = arith.subf %9, %12 : vector<8x8xf32>
    %14 = math.exp %13 : vector<8x8xf32>
    %cst_10 = arith.constant dense<0.000000e+00> : vector<8xf32>
    %15 = vector.multi_reduction <add>, %14, %cst_10 [1] : vector<8x8xf32> to vector<8xf32>
    %16 = vector.shape_cast %15 : vector<8xf32> to vector<8x1xf32>
    %c0_11 = arith.constant 0 : index
    %c0_12 = arith.constant 0 : index
    %17 = vector.load %arg5[%c0_11, %c0_12] : memref<8x256xf32, #tpu.memory_space<vmem>>, vector<8x256xf32>
    %cst_13 = arith.constant dense<0.000000e+00> : vector<8x256xf32>
    %18 = tpu.matmul %14, %17, %cst_13 {dimension_numbers = #tpu.dot_dimension_numbers<[1], [0], [0], [1], [0, 0, 1, 1], [], []>} : vector<8x8xf32>, vector<8x256xf32>, vector<8x256xf32> -> vector<8x256xf32>
    %19 = arith.mulf %0, %18 : vector<8x256xf32>
    %c0_14 = arith.constant 0 : index
    %c0_15 = arith.constant 0 : index
    %20 = vector.load %arg6[%c0_14, %c0_15] : memref<256x32xf32, #tpu.memory_space<vmem>>, vector<256x32xf32>
    %cst_16 = arith.constant dense<0.000000e+00> : vector<8x32xf32>
    %21 = tpu.matmul %19, %20, %cst_16 {dimension_numbers = #tpu.dot_dimension_numbers<[1], [0], [0], [1], [0, 0, 1, 1], [], []>} : vector<8x256xf32>, vector<256x32xf32>, vector<8x32xf32> -> vector<8x32xf32>
    %cst_17 = arith.constant 1.000000e+00 : f32
    %22 = vector.broadcast %cst_17 : f32 to vector<8x1xf32>
    %23 = arith.divf %22, %16 : vector<8x1xf32>
    %24 = vector.broadcast %23 : vector<8x1xf32> to vector<8x32xf32>
    %25 = arith.mulf %21, %24 : vector<8x32xf32>
    %c0_18 = arith.constant 0 : index
    %c0_19 = arith.constant 0 : index
    %26 = vector.load %arg7[%c0_18, %c0_19] : memref<8x32xf32, #tpu.memory_space<vmem>>, vector<8x32xf32>
    tpu.vector_store %arg7[%c0_18, %c0_19], %25 {strides = array<i32>} : memref<8x32xf32, #tpu.memory_space<vmem>>, vector<8x32xf32>,
    return
  }
  func.func @transform_0(%arg0: i32) -> (i32, i32) {
    %c0_i32 = arith.constant 0 : i32
    %c0_i32_0 = arith.constant 0 : i32
    return %arg0, %c0_i32 : i32, i32
  }
  func.func @transform_1(%arg0: i32) -> (i32, i32) {
    %c0_i32 = arith.constant 0 : i32
    %c0_i32_0 = arith.constant 0 : i32
    %c0_i32_1 = arith.constant 0 : i32
    return %c0_i32, %c0_i32_0 : i32, i32
  }
  func.func @transform_2(%arg0: i32) -> (i32, i32) {
    %c0_i32 = arith.constant 0 : i32
    %c0_i32_0 = arith.constant 0 : i32
    %c0_i32_1 = arith.constant 0 : i32
    return %c0_i32, %c0_i32_0 : i32, i32
  }
  func.func @transform_3(%arg0: i32) -> (i32, i32) {
    %c0_i32 = arith.constant 0 : i32
    %c0_i32_0 = arith.constant 0 : i32
    %c0_i32_1 = arith.constant 0 : i32
    return %c0_i32, %c0_i32_0 : i32, i32
  }
  func.func @transform_4(%arg0: i32) -> (i32, i32) {
    %c0_i32 = arith.constant 0 : i32
    %c0_i32_0 = arith.constant 0 : i32
    %c0_i32_1 = arith.constant 0 : i32
    return %c0_i32, %c0_i32_0 : i32, i32
  }
  func.func @transform_5(%arg0: i32) -> (i32, i32) {
    %c0_i32 = arith.constant 0 : i32
    %c0_i32_0 = arith.constant 0 : i32
    %c0_i32_1 = arith.constant 0 : i32
    return %c0_i32, %c0_i32_0 : i32, i32
  }
  func.func @transform_6(%arg0: i32) -> (i32, i32) {
    %c0_i32 = arith.constant 0 : i32
    %c0_i32_0 = arith.constant 0 : i32
    return %arg0, %c0_i32 : i32, i32
  }
}

</mosaic_0001>

<bundles_post_ra>
// kernel: tpu_custom_call.1
= control target key start
LH: loop header
LB: loop body
LE: loop exit
PB: predicated region body
PF: predicated region fallthrough
CT: control target
= control target key end

     0   :  { %11 = vsyncpa [#allocation3], 0  ;;  %v623_v5 = vmov 1983009808   ;;  %v76_v7 = vlaneseq  ;;  %v624_v48 = vmov 0.0   ;;  %vm625_vm0 = vmmov 0   ;;  %s918_s0 = inlined_call_operand.vmem [shape: f32[2,256], index: 0, kind: input, shape index: {}]   ;;  %s919_s1 = inlined_call_operand.vmem [shape: f32[256,32], index: 1, kind: input, shape index: {}]   ;;  %s920_s2 = inlined_call_operand.vmem [shape: f32[1,32], index: 2, kind: input, shape index: {}]   ;;  %s921_s3 = inlined_call_operand.vmem [shape: f32[32,8], index: 3, kind: input, shape index: {}]   ;;  %s922_s4 = inlined_call_operand.vmem [shape: f32[8,256], index: 4, kind: input, shape index: {}]   ;;  %s923_s5 = inlined_call_operand.vmem [shape: f32[256,32], index: 5, kind: input, shape index: {}]   ;;  %s924_s6 = inlined_call_operand.hbm [shape: f32[2,32], index: 6, kind: output, shape index: {}]  }
   0x1   :  { %v59_v0 = vld [vmem:[%s919_s1 + $0xf8] sm:$0xff]  ;;  %v58_v2 = vld [vmem:[%s919_s1 + $0xf0] sm:$0xff]  ;;  %v57_v4 = vld [vmem:[%s919_s1 + $0xe8] sm:$0xff]  ;;  %v74_v6 = vunpack.c.l.s4 %v623_v5  ;;  %319 = vmatprep.mubr.f32.mxu1 %v624_v48  ;;  %vm166_vm1 = vcmask 261120   ;;  %vm240_vm2 = vcmask 64512  }
   0x2   :  { %v43_v1 = vld [vmem:[%s919_s1 + $0x78] sm:$0xff]  ;;  %503 = vmatprep.subr.mxu0 %v59_v0  ;;  %v42_v3 = vld [vmem:[%s919_s1 + $0x70] sm:$0xff]  ;;  %v41_v8 = vld [vmem:[%s919_s1 + $0x68] sm:$0xff]  ;;  %v77_v13 = vshrl.u32 %v76_v7, 7 }
   0x3   :  { %504 = vmatpush3.msra.mxu0 %v43_v1  ;;  %v56_v9 = vld [vmem:[%s919_s1 + $0xe0] sm:$0xff]  ;;  %v55_v11 = vld [vmem:[%s919_s1 + $0xd8] sm:$0xff]  ;;  %v75_v12 = vunpack.c.0.s8 %v74_v6  ;;  %v54_v15 = vld [vmem:[%s919_s1 + $0xd0] sm:$0xff] }
   0x4   :  { %505 = vmatprep.subr.mxu0 %v58_v2  ;;  %v40_v10 = vld [vmem:[%s919_s1 + $0x60] sm:$0xff]  ;;  %v39_v14 = vld [vmem:[%s919_s1 + $0x58] sm:$0xff]  ;;  %v38_v16 = vld [vmem:[%s919_s1 + $0x50] sm:$0xff] }
   0x5   :  { %506 = vmatpush3.msra.mxu0 %v42_v3  ;;  %v53_v17 = vld [vmem:[%s919_s1 + $0xc8] sm:$0xff]  ;;  %v706_v19 = vsub.s32 %v75_v12, %v77_v13  ;;  %v711_v20 = vld [vmem:[%s918_s0] sm:$0xf]  ;;  %v716_v21 = vld [vmem:[%s918_s0 + $0x4] sm:$0xf] }
   0x6   :  { %507 = vmatprep.subr.mxu0 %v57_v4  ;;  %v37_v18 = vld [vmem:[%s919_s1 + $0x48] sm:$0xff]  ;;  %v52_v23 = vld [vmem:[%s919_s1 + $0xc0] sm:$0xff]  ;;  %v71_v25 = vcombine.low %v711_v20, %v716_v21  ;;  %v51_v28 = vld [vmem:[%s919_s1 + $0xb8] sm:$0xff] }
   0x7   :  { %508 = vmatpush3.msra.mxu0 %v41_v8  ;;  %v721_v22 = vld [vmem:[%s918_s0 + $0x8] sm:$0xf]  ;;  %v729_v24 = vld [vmem:[%s918_s0 + $0xc] sm:$0xf]  ;;  %v36_v26 = vld [vmem:[%s919_s1 + $0x40] sm:$0xff] }
   0x8   :  { %509 = vmatprep.subr.mxu0 %v56_v9  ;;  %v72_v27 = vcombine.low %v721_v22, %v729_v24  ;;  %v79_v29 = vrot.slane %v71_v25, %v706_v19  ;;  %v35_v30 = vld [vmem:[%s919_s1 + $0x38] sm:$0xff]  ;;  %v50_v32 = vld [vmem:[%s919_s1 + $0xb0] sm:$0xff]  ;;  %v49_v35 = vld [vmem:[%s919_s1 + $0xa8] sm:$0xff] }
   0x9   :  { %510 = vmatpush3.msra.mxu0 %v40_v10  ;;  %v34_v33 = vld [vmem:[%s919_s1 + $0x30] sm:$0xff]  ;;  %v33_v36 = vld [vmem:[%s919_s1 + $0x28] sm:$0xff]  ;;  %v48_v37 = vld [vmem:[%s919_s1 + $0xa0] sm:$0xff] }
   0xa   :  { %511 = vmatprep.subr.mxu0 %v55_v11  ;;  %v86_v31 = vrot.slane %v72_v27, %v706_v19  ;;  %v32_v38 = vld [vmem:[%s919_s1 + $0x20] sm:$0xff]  ;;  %v47_v39 = vld [vmem:[%s919_s1 + $0x98] sm:$0xff]  ;;  %v46_v41 = vld [vmem:[%s919_s1 + $0x90] sm:$0xff] }
   0xb   :  { %512 = vmatpush3.msra.mxu0 %v39_v14  ;;  %v31_v40 = vld [vmem:[%s919_s1 + $0x18] sm:$0xff]  ;;  %v30_v42 = vld [vmem:[%s919_s1 + $0x10] sm:$0xff]  ;;  %v45_v43 = vld [vmem:[%s919_s1 + $0x88] sm:$0xff] }
   0xc   :  { %513 = vmatprep.subr.mxu0 %v54_v15  ;;  %v88_v34 = vcombine.high %v79_v29, %v86_v31  ;;  %v29_v44 = vld [vmem:[%s919_s1 + $0x8] sm:$0xff]  ;;  %v44_v45 = vld [vmem:[%s919_s1 + $0x80] sm:$0xff]  ;;  %v87_v47 = vcombine.low %v79_v29, %v86_v31  ;;  %v165_v49 = vld [vmem:[%s921_s3 + $0x18] sm:$0xff] }
   0xd   :  { %514 = vmatpush3.msra.mxu0 %v38_v16  ;;  %v28_v46 = vld [vmem:[%s919_s1] sm:$0xff]  ;;  %v164_v50 = vld [vmem:[%s921_s3 + $0x10] sm:$0xff]  ;;  %v163_v51 = vld [vmem:[%s921_s3 + $0x8] sm:$0xff] }
   0xe   :  { %515 = vmatprep.subr.mxu0 %v53_v17  ;;  %155 = vmatprep.mubr.f32.mxu0 %v88_v34  ;;  %v162_v52 = vld [vmem:[%s921_s3] sm:$0xff]  ;;  %v251_v62 = vld [vmem:[%s922_s4 + $0x8] sm:$0xff]  ;;  %v385_v5 = vld [vmem:[%s923_s5 + $0xf8] sm:$0xff] }
   0xf   :  { %516 = vmatpush3.msra.mxu0 %v37_v18  ;;  %v500_v54 = vld [vmem:[%s920_s2] ss:$0 sm:$0xff]  ;;  %285 = vmatprep.subr.mxu1 %v251_v62  ;;  %v369_v6 = vld [vmem:[%s923_s5 + $0x78] sm:$0xff]  ;;  %v384_v7 = vld [vmem:[%s923_s5 + $0xf0] sm:$0xff] }
  0x10   :  { %517 = vmatprep.subr.mxu0 %v52_v23  ;;  %v250_v63 = vld [vmem:[%s922_s4] sm:$0xff]  ;;  %v368_v8 = vld [vmem:[%s923_s5 + $0x70] sm:$0xff]  ;;  %v383_v9 = vld [vmem:[%s923_s5 + $0xe8] sm:$0xff] }
  0x11   :  { %518 = vmatpush3.msra.mxu0 %v36_v26  ;;  %286 = vmatpush1.msra.mxu1 %v250_v63  ;;  %v367_v10 = vld [vmem:[%s923_s5 + $0x68] sm:$0xff]  ;;  %v382_v11 = vld [vmem:[%s923_s5 + $0xe0] sm:$0xff]  ;;  %v381_v13 = vld [vmem:[%s923_s5 + $0xd8] sm:$0xff] }
  0x12   :  { %519 = vmatprep.subr.mxu0 %v51_v28  ;;  %543 = vmatprep.subr.mxu1 %v385_v5  ;;  %v366_v12 = vld [vmem:[%s923_s5 + $0x60] sm:$0xff]  ;;  %v365_v14 = vld [vmem:[%s923_s5 + $0x58] sm:$0xff]  ;;  %v380_v15 = vld [vmem:[%s923_s5 + $0xd0] sm:$0xff] }
  0x13   :  { %520 = vmatpush3.msra.mxu0 %v35_v30  ;;  %v364_v16 = vld [vmem:[%s923_s5 + $0x50] sm:$0xff]  ;;  %v379_v17 = vld [vmem:[%s923_s5 + $0xc8] sm:$0xff]  ;;  %v378_v23 = vld [vmem:[%s923_s5 + $0xc0] sm:$0xff] }
  0x14   :  { %521 = vmatprep.subr.mxu0 %v50_v32  ;;  %v363_v18 = vld [vmem:[%s923_s5 + $0x48] sm:$0xff]  ;;  %v362_v25 = vld [vmem:[%s923_s5 + $0x40] sm:$0xff]  ;;  %v377_v26 = vld [vmem:[%s923_s5 + $0xb8] sm:$0xff] }
  0x15   :  { %522 = vmatpush3.msra.mxu0 %v34_v33  ;;  %v361_v27 = vld [vmem:[%s923_s5 + $0x38] sm:$0xff]  ;;  %v376_v28 = vld [vmem:[%s923_s5 + $0xb0] sm:$0xff]  ;;  %v375_v30 = vld [vmem:[%s923_s5 + $0xa8] sm:$0xff] }
  0x16   :  { %523 = vmatprep.subr.mxu0 %v49_v35  ;;  %v360_v29 = vld [vmem:[%s923_s5 + $0x30] sm:$0xff]  ;;  %v359_v31 = vld [vmem:[%s923_s5 + $0x28] sm:$0xff]  ;;  %v374_v32 = vld [vmem:[%s923_s5 + $0xa0] sm:$0xff] }
  0x17   :  { %524 = vmatpush3.msra.mxu0 %v33_v36  ;;  %v358_v33 = vld [vmem:[%s923_s5 + $0x20] sm:$0xff]  ;;  %v373_v34 = vld [vmem:[%s923_s5 + $0x98] sm:$0xff]  ;;  %v372_v36 = vld [vmem:[%s923_s5 + $0x90] sm:$0xff] }
  0x18   :  { %525 = vmatprep.subr.mxu0 %v48_v37  ;;  %v357_v35 = vld [vmem:[%s923_s5 + $0x18] sm:$0xff]  ;;  %v356_v37 = vld [vmem:[%s923_s5 + $0x10] sm:$0xff] }
  0x19   :  { %526 = vmatpush3.msra.mxu0 %v32_v38  ;;  %v371_v38 = vld [vmem:[%s923_s5 + $0x88] sm:$0xff] }
  0x1a   :  { %527 = vmatprep.subr.mxu0 %v47_v39  ;;  %v355_v39 = vld [vmem:[%s923_s5 + $0x8] sm:$0xff] }
  0x1b   :  { %528 = vmatpush3.msra.mxu0 %v31_v40  ;;  %v370_v40 = vld [vmem:[%s923_s5 + $0x80] sm:$0xff] }
  0x1c   :  { %529 = vmatprep.subr.mxu0 %v46_v41  ;;  %v354_v41 = vld [vmem:[%s923_s5] sm:$0xff] }
  0x1d   :  { %530 = vmatpush3.msra.mxu0 %v30_v42 }
  0x1e   :  { %531 = vmatprep.subr.mxu0 %v45_v43 }
  0x1f   :  { %532 = vmatpush3.msra.mxu0 %v29_v44 }
  0x20   :  { %533 = vmatprep.subr.mxu0 %v44_v45 }
  0x21   :  { %534 = vmatpush3.msra.mxu0 %v28_v46 }
  0x22   :  { %156 = vmatmul.mubr.f32.vlgmr.msra.gmra.mxu0 %v87_v47  ;;  %578 = vmatprep.subr.mxu0 %v624_v48 }
  0x23   :  { %579 = vmatpush3.msra.mxu0 %v165_v49  ;;  %586 = vmatprep.mubr.msk.f32.mxu0 %vm625_vm0, %v624_v48 }
  0x24   :  { %580 = vmatprep.subr.mxu0 %v624_v48 }
  0x25   :  { %581 = vmatpush3.msra.mxu0 %v164_v50 }
  0x26   :  { %582 = vmatprep.subr.mxu0 %v624_v48 }
  0x27   :  { %583 = vmatpush3.msra.mxu0 %v163_v51 }
  0x28   :  { %584 = vmatprep.subr.mxu0 %v624_v48 }
  0x29   :  { %585 = vmatpush3.msra.mxu0 %v162_v52 }
  0xe2   :  { %v535_v53 = vpop.f32.mrf.mxu0 }
  0xe4   :  { %v536_v55 = vpop.f32.mrf.mxu0 }
  0xe5   :  { %v537_v56 = vadd.f32 %v536_v55, %v535_v53 }
  0xe7   :  { %v158_v57 = vadd.f32 %v537_v56, %v500_v54 }
  0xe9   :  { %v161_v58 = vmax.f32 %v158_v57, 0.0 }
  0xeb   :  { %587 = vmatmul.mubr.msk.f32.vlgmr.msra.gmra.mxu0 %vm166_vm1, %v161_v58 }
 0x1ab   :  { %v236_v59 = vpop.f32.mrf.mxu0 }
 0x1ac   :  { %v241_v60 = vsel %vm240_vm2, %v236_v59, -inf }
 0x1ad   :  { %242 = vmax.xlane.f32.xlu0 %v241_v60  ;;  %v588_v61 = vpop.f32.mrf.mxu0 }
 0x236   :  { %v243_v0 = vpop.xlane.xlu0 %242 }
 0x237   :  { %v244_v1 = vsub.f32 %v236_v59, %v243_v0 }
 0x239   :  { %v245_v2 = vmul.f32 1.442695, %v244_v1 }
 0x23b   :  { %597 = vpow2.f32 %v245_v2 }
 0x248   :  { %v598_v3 = vpop.eup %597 }
 0x249   :  { %502 = vmatmul.mubr.msk.f32.vlgmr.msra.gmra.mxu1 %vm240_vm2, %v598_v3  ;;  %v247_v4 = vsel %vm240_vm2, %v598_v3, 0.0 }
 0x24a   :  { %248 = vadd.xlane.f32.xlu0 %v247_v4  ;;  %544 = vmatpush3.msra.mxu1 %v369_v6 }
 0x24b   :  { %545 = vmatprep.subr.mxu1 %v384_v7 }
 0x24c   :  { %546 = vmatpush3.msra.mxu1 %v368_v8 }
 0x24d   :  { %547 = vmatprep.subr.mxu1 %v383_v9 }
 0x24e   :  { %548 = vmatpush3.msra.mxu1 %v367_v10 }
 0x24f   :  { %549 = vmatprep.subr.mxu1 %v382_v11 }
 0x250   :  { %550 = vmatpush3.msra.mxu1 %v366_v12 }
 0x251   :  { %551 = vmatprep.subr.mxu1 %v381_v13 }
 0x252   :  { %552 = vmatpush3.msra.mxu1 %v365_v14 }
 0x253   :  { %553 = vmatprep.subr.mxu1 %v380_v15 }
 0x254   :  { %554 = vmatpush3.msra.mxu1 %v364_v16 }
 0x255   :  { %555 = vmatprep.subr.mxu1 %v379_v17 }
 0x256   :  { %556 = vmatpush3.msra.mxu1 %v363_v18 }
 0x257   :  { %557 = vmatprep.subr.mxu1 %v378_v23 }
 0x258   :  { %558 = vmatpush3.msra.mxu1 %v362_v25 }
 0x259   :  { %559 = vmatprep.subr.mxu1 %v377_v26 }
 0x25a   :  { %560 = vmatpush3.msra.mxu1 %v361_v27 }
 0x25b   :  { %561 = vmatprep.subr.mxu1 %v376_v28 }
 0x25c   :  { %562 = vmatpush3.msra.mxu1 %v360_v29 }
 0x25d   :  { %563 = vmatprep.subr.mxu1 %v375_v30 }
 0x25e   :  { %564 = vmatpush3.msra.mxu1 %v359_v31 }
 0x25f   :  { %565 = vmatprep.subr.mxu1 %v374_v32 }
 0x260   :  { %566 = vmatpush3.msra.mxu1 %v358_v33 }
 0x261   :  { %567 = vmatprep.subr.mxu1 %v373_v34 }
 0x262   :  { %568 = vmatpush3.msra.mxu1 %v357_v35 }
 0x263   :  { %569 = vmatprep.subr.mxu1 %v372_v36 }
 0x264   :  { %570 = vmatpush3.msra.mxu1 %v356_v37 }
 0x265   :  { %571 = vmatprep.subr.mxu1 %v371_v38 }
 0x266   :  { %572 = vmatpush3.msra.mxu1 %v355_v39 }
 0x267   :  { %573 = vmatprep.subr.mxu1 %v370_v40 }
 0x268   :  { %574 = vmatpush3.msra.mxu1 %v354_v41 }
 0x2d3   :  { %v249_v60 = vpop.xlane.xlu0 %248 }
 0x2d4   :  { %599 = vrcp.f32 %v249_v60 }
 0x309   :  { %v321_v42 = vpop.f32.mrf.mxu1 }
 0x30b   :  { %v323_v43 = vpop.f32.mrf.mxu1 }
 0x30c   :  { %v328_v44 = vcombine.low %v321_v42, %v323_v43  ;;  %v329_v45 = vcombine.high %v321_v42, %v323_v43 }
 0x30e   :  { %v336_v46 = vrot.slane %v328_v44, %v706_v19  ;;  %v343_v47 = vrot.slane %v329_v45, %v706_v19 }
 0x310   :  { %v344_v48 = vcombine.high %v336_v46, %v336_v46  ;;  %v345_v49 = vcombine.high %v343_v47, %v343_v47  ;;  %v350_v50 = vmul.f32 %v336_v46, %v711_v20  ;;  %v352_v52 = vmul.f32 %v343_v47, %v721_v22 }
 0x312   :  { %v351_v51 = vmul.f32 %v344_v48, %v716_v21  ;;  %v353_v53 = vmul.f32 %v345_v49, %v729_v24  ;;  %v600_v21 = vpop.eup %599 }
 0x314   :  { %v390_v54 = vcombine.low %v350_v50, %v351_v51  ;;  %v391_v55 = vcombine.low %v352_v52, %v353_v53 }
 0x316   :  { %v398_v56 = vrot.slane %v390_v54, %v706_v19  ;;  %v405_v57 = vrot.slane %v391_v55, %v706_v19 }
 0x318   :  { %v407_v58 = vcombine.high %v398_v56, %v405_v57  ;;  %v406_v59 = vcombine.low %v398_v56, %v405_v57 }
 0x31a   :  { %474 = vmatprep.mubr.f32.mxu1 %v407_v58 }
 0x31b   :  { %475 = vmatmul.mubr.f32.vlgmr.msra.gmra.mxu1 %v406_v59 }
 0x3db   :  { %v575_v61 = vpop.f32.mrf.mxu1 }
 0x3dd   :  { %v576_v20 = vpop.f32.mrf.mxu1 }
 0x3de   :  { %v577_v62 = vadd.f32 %v576_v20, %v575_v61 }
 0x3e0   :  { %v482_v63 = vmul.f32 %v600_v21, %v577_v62 }
 0x3e2   :  { %483 = vst.msk [vmem:[#allocation2] sm:$0xff] %vm166_vm1, %v482_v63 }
 0x3e3   :  { %488 = vsyncadd [#allocation3], 96  ;;  %s626_s5 = smov [#allocation2]  }
 0x3e4   :  { %s489_s11 = sshll.u32 %s626_s5, 4  ;;  %s490_s11 = int_to_ptr.vmem [resolvable:$true] %s489_s11 }
 0x3e5   :  { %s601_s12 = scalar_lea.vmem %s490_s11, 32  ;;  %s605_s13 = scalar_lea.vmem %s490_s11, 128 }
 0x3e6   :  { %p602_p0 = scmp.ne.s32.totalorder %s490_s11, %s601_s12  ;;  %p606_p1 = scmp.lt.s32.totalorder %s490_s11, %s490_s11 }
 0x3e7   :  { %p607_p2 = scmp.lt.s32.totalorder %s605_s13, %s601_s12 }
 0x3e9   :  { %p608_p3 = por %p607_p2, %p606_p1 }
 0x3eb   :  { %p609_p4 = pnand %p608_p3, %p602_p0 }
 0x3ed   :  { %612 = shalt.err (!%p609_p4)
}
 0x3ee   :  { %s627_s14 = smov 32   ;;  %s628_s0 = smov 2  }
 0x3ef   :  { %495 = dma.vmem_to_hbm [thread:$0]  %s490_s11, 32, %s924_s6, [#allocation3], %s627_s14, %s627_s14, %s628_s0  }
 0x3f0   :  { %621 = dma.done.wait [#allocation3], 128  }
 0x3f1   :  { %622 = vsyncadd [#allocation3], 4294967168 }
 0x3f2   :  { %499 = vsyncpa [#allocation3], 1 }

</bundles_post_ra>
